<compile_context>
chip_gen: v6e
topology: v6e:2x2x1
jax: 0.10.0
libtpu: 0.0.40
codegen_flags: <defaults>
</compile_context>

<pallas_src>
import jax
import jax.numpy as jnp
from jax.experimental import pallas as pl
from jax.experimental.pallas import tpu as pltpu

BN_EPS = 1e-5
LANE = 128          # lane width (last-dim granularity)
BF16_SUBLANE = 16   # bf16 packs 16 rows per vreg -> batch-tile granularity


def _round_up(x, m):
    return (x + m - 1) // m * m


def _device_kind():
    try:
        return jax.devices()[0].device_kind or ""
    except Exception:
        return ""


def _pick_tm(B, device_kind=""):
    """Batch tile: bf16-sublane aligned; sweep per-generation candidates to
    minimize zero-row padding for large B (128 tiles on v5e, up to 256 on
    v6e/v7x where the MXU is 256-wide)."""
    kind = (device_kind or "").lower()
    is_v5e = ("v5e" in kind) or ("v5 lite" in kind) or ("v5lite" in kind)
    cands = (64, 96, 128) if is_v5e else (128, 256)
    if B <= cands[-1]:
        return max(_round_up(B, BF16_SUBLANE), BF16_SUBLANE)
    best = None
    for tm in cands:
        waste = _round_up(B, tm) - B
        if best is None or waste < best[0] or (waste == best[0] and tm > best[1]):
            best = (waste, tm)
    return best[1]


def _vmem_limit_bytes(folded, TM, F0p, Np_out, device_kind):
    w_bytes = sum(w.size * w.dtype.itemsize for w, _ in folded)      # single copy (scratch)
    b_bytes = 2 * sum(b.size * b.dtype.itemsize for _, b in folded)  # pipelined biases
    x_bytes = 2 * TM * F0p * 2                                       # bf16 x tile, double-buffered
    o_bytes = 2 * TM * Np_out * 2                                    # bf16 out tile, double-buffered
    max_k = max(w.shape[0] for w, _ in folded)
    max_n = max(w.shape[1] for w, _ in folded)
    act_bytes = 2 * TM * max_n * 4 + 2 * TM * max_k * 2              # y (f32) + h (bf16) temps
    est = w_bytes + b_bytes + x_bytes + o_bytes + act_bytes
    kind = (device_kind or "").lower()
    ceiling = (48 << 20) if "v7" in kind else (96 << 20)             # v7x has 64 MiB total VMEM
    return int(min(max(2 * est, 16 << 20), ceiling))


# ---------------- fused Pallas kernel ----------------

def _make_fused_mlp_kernel(num_layers):
    """x -> [matmul + bias + ReLU] * (L-1) -> matmul + bias (bf16 store).

    refs layout after x_ref:
      [w_hbm_0, b_0, ..., w_hbm_{L-1}, b_{L-1}, o_ref,
       wbuf_0, ..., wbuf_{L-1}, dma_sem]
    Weights already have eval-mode BatchNorm folded in, so the epilogue is
    just bias-add + ReLU (minimal VPU work; MXU is the binding unit).
    """
    L = num_layers

    def kernel(x_ref, *refs):
        layer_refs = refs[:2 * L]          # (w_hbm, bias) pairs
        o_ref = refs[2 * L]
        wbufs = refs[2 * L + 1: 3 * L + 1]
        sem = refs[3 * L + 1]

        first = pl.program_id(0) == 0

        # First batch tile: kick off every layer's weight DMA up front so
        # layer-l compute overlaps the remaining in-flight weight fetches.
        # The VMEM scratch buffers persist across grid iterations, so later
        # batch tiles reuse the resident (single-buffered) weights for free.
        @pl.when(first)
        def _():
            for li in range(L):
                pltpu.make_async_copy(
                    layer_refs[2 * li], wbufs[li], sem.at[li]).start()

        h = x_ref[...]                                        # bf16 [TM, F0p]
        for li in range(L):
            @pl.when(first)
            def _(li=li):                                     # just-in-time wait
                pltpu.make_async_copy(
                    layer_refs[2 * li], wbufs[li], sem.at[li]).wait()
            w = wbufs[li][...]                                # bf16 [Kp, Np]
            b = layer_refs[2 * li + 1][...]                   # f32  [1, Np]
            y = jnp.dot(h, w, preferred_element_type=jnp.float32) + b
            if li + 1 < L:
                h = jnp.maximum(y, 0.0).astype(jnp.bfloat16)
            else:
                o_ref[...] = y.astype(o_ref.dtype)            # lane-dense bf16 store

    return kernel


def fused_mlp(x2d, folded):
    """x2d: [B, F_in] float; folded: list of (W_bf16 [Kp, Np], b_f32 [1, Np])."""
    B, F_in = x2d.shape
    F0p = folded[0][0].shape[0]
    Np_out = folded[-1][0].shape[1]
    num_layers = len(folded)
    kind = _device_kind()

    TM = _pick_tm(B, kind)
    Bp = _round_up(B, TM)
    num_tiles = Bp // TM

    # Skip the pad copy entirely if x is already aligned; otherwise jnp.pad
    # (padded rows/lanes hit zero-padded weight rows -> contribute nothing).
    xb = x2d.astype(jnp.bfloat16)
    if B == Bp and F_in == F0p:
        xp = xb
    else:
        xp = jnp.pad(xb, ((0, Bp - B), (0, F0p - F_in)))

    in_specs = [pl.BlockSpec((TM, F0p), lambda i: (i, 0))]
    flat_params = []
    for w, b in folded:
        _, Np = w.shape
        # Weights stay in HBM (pl.ANY); the kernel DMAs them once into scratch.
        in_specs.append(pl.BlockSpec(memory_space=pl.ANY))
        # Biases are tiny: constant index_map -> fetched once, stays resident.
        in_specs.append(pl.BlockSpec((1, Np), lambda i: (0, 0)))
        flat_params += [w, b]

    scratch_shapes = [pltpu.VMEM(w.shape, jnp.bfloat16) for w, _ in folded]
    scratch_shapes.append(pltpu.SemaphoreType.DMA((num_layers,)))

    flops = int(sum(2 * Bp * w.shape[0] * w.shape[1] for w, _ in folded))
    bytes_accessed = int(
        xp.size * xp.dtype.itemsize
        + sum(w.size * w.dtype.itemsize + b.size * b.dtype.itemsize
              for w, b in folded)
        + Bp * Np_out * 2)

    return pl.pallas_call(
        _make_fused_mlp_kernel(num_layers),
        out_shape=jax.ShapeDtypeStruct((Bp, Np_out), jnp.bfloat16),
        grid=(num_tiles,),
        in_specs=in_specs,
        out_specs=pl.BlockSpec((TM, Np_out), lambda i: (i, 0)),
        scratch_shapes=scratch_shapes,
        compiler_params=pltpu.CompilerParams(
            # "arbitrary": the weight scratch is filled on the first batch tile
            # and reused by later tiles, so the batch axis must run sequentially
            # on one core (measured parallel-vs-arbitrary delta is ~0 anyway).
            dimension_semantics=("arbitrary",),
            vmem_limit_bytes=_vmem_limit_bytes(folded, TM, F0p, Np_out, kind)),
        cost_estimate=pl.CostEstimate(
            flops=flops, transcendentals=0, bytes_accessed=bytes_accessed),
    )(xp, *flat_params)


# ---------------- parameter handling ----------------

def init_mnlp_params(key, input_size, hidden_sizes, num_classes):
    params = {"hidden": [], "classifier": None}
    prev = input_size
    for h in hidden_sizes:
        key, kw, kb, kg, kbt, km, kv = jax.random.split(key, 7)
        params["hidden"].append({
            # W stored as [in, out] so the kernel does x[B,in] @ W[in,out]
            "w": jax.random.normal(kw, (prev, h), jnp.float32) / jnp.sqrt(prev),
            "b": 0.01 * jax.random.normal(kb, (h,), jnp.float32),
            "gamma": 1.0 + 0.1 * jax.random.normal(kg, (h,), jnp.float32),
            "beta": 0.1 * jax.random.normal(kbt, (h,), jnp.float32),
            "mean": 0.05 * jax.random.normal(km, (h,), jnp.float32),
            "var": 1.0 + 0.1 * jax.random.uniform(kv, (h,), jnp.float32),
        })
        prev = h
    key, kw, kb = jax.random.split(key, 3)
    params["classifier"] = {
        "w": jax.random.normal(kw, (prev, num_classes), jnp.float32) / jnp.sqrt(prev),
        "b": 0.01 * jax.random.normal(kb, (num_classes,), jnp.float32),
    }
    return params


def _pad_wb(w, b):
    K, N = w.shape
    Kp, Np = _round_up(K, LANE), _round_up(N, LANE)
    wp = jnp.zeros((Kp, Np), jnp.float32).at[:K, :N].set(w).astype(jnp.bfloat16)
    bp = jnp.zeros((1, Np), jnp.float32).at[0, :N].set(b)
    return wp, bp


def fold_and_pad_params(params):
    """Fold eval-mode BN + bias into each hidden layer's weights, pad all
    layers to lane-dense (128-multiple) shapes, cast weights to bf16."""
    folded = []
    for l in params["hidden"]:
        scale = l["gamma"] * jax.lax.rsqrt(l["var"] + BN_EPS)          # [H]
        w = l["w"] * scale[None, :]
        b = (l["b"] - l["mean"]) * scale + l["beta"]
        folded.append(_pad_wb(w, b))
    c = params["classifier"]
    folded.append(_pad_wb(c["w"], c["b"]))
    return folded


def mnlp_forward(folded, x, num_classes):
    B = x.shape[0]
    x2 = x.reshape(B, -1)                      # x.view(x.size(0), -1)
    out = fused_mlp(x2, folded)
    return out[:B, :num_classes].astype(jnp.float32)   # strip padding


# ---------------- references (pure JAX) ----------------

def mnlp_forward_ref_matched(folded, x, num_classes):
    """Same math as the kernel (folded bf16 weights, f32 acc, bf16 output)."""
    x2 = x.reshape(x.shape[0], -1).astype(jnp.bfloat16)
    F0p = folded[0][0].shape[0]
    h = jnp.pad(x2, ((0, 0), (0, F0p - x2.shape[1])))
    y = None
    for li, (w, b) in enumerate(folded):
        y = jnp.dot(h, w, preferred_element_type=jnp.float32) + b
        if li + 1 < len(folded):
            h = jnp.maximum(y, 0.0).astype(jnp.bfloat16)
    return y.astype(jnp.bfloat16)[:, :num_classes].astype(jnp.float32)


def mnlp_forward_ref_f32(params, x):
    """Unfolded full-f32 reference of the original module (eval mode)."""
    h = x.reshape(x.shape[0], -1)
    for l in params["hidden"]:
        y = h @ l["w"] + l["b"]
        y = (y - l["mean"]) * jax.lax.rsqrt(l["var"] + BN_EPS) * l["gamma"] + l["beta"]
        h = jnp.maximum(y, 0.0)
    c = params["classifier"]
    return h @ c["w"] + c["b"]


if __name__ == "__main__":
    key = jax.random.PRNGKey(0)
    k_in, k_par, k_in2 = jax.random.split(key, 3)

    # small shapes consistent with the module: NCHW input, flattened in forward
    batch, C, H, W = 8, 4, 4, 4
    input_size = C * H * W           # 64  -> padded to 128 lanes
    hidden_sizes = [64, 32]          # exercises lane padding
    num_classes = 10                 # -> padded to 128 lanes, sliced after kernel

    x = jax.random.normal(k_in, (batch, C, H, W), jnp.float32)
    params = init_mnlp_params(k_par, input_size, hidden_sizes, num_classes)
    folded = fold_and_pad_params(params)

    # small-batch / single-tile path (weight DMA overlapped with compute)
    out = mnlp_forward(folded, x, num_classes)
    out = jax.block_until_ready(out)
    assert out.shape == (batch, num_classes)

    ref_same = mnlp_forward_ref_matched(folded, x, num_classes)
    assert jnp.allclose(out, ref_same, atol=3e-2, rtol=3e-2), \
        "mismatch vs matched bf16 reference"

    ref_f32 = mnlp_forward_ref_f32(params, x)
    assert jnp.allclose(out, ref_f32, atol=1e-1, rtol=1e-1), \
        "mismatch vs f32 eval-mode reference"

    # multi-tile path: weights fetched on the first tile, reused (VMEM-resident)
    # by subsequent batch tiles; also exercises the TM padding-waste sweep.
    B2 = 300
    x2 = jax.random.normal(k_in2, (B2, C, H, W), jnp.float32)
    out2 = jax.block_until_ready(mnlp_forward(folded, x2, num_classes))
    assert out2.shape == (B2, num_classes)
    ref2 = mnlp_forward_ref_matched(folded, x2, num_classes)
    assert jnp.allclose(out2, ref2, atol=3e-2, rtol=3e-2), \
        "mismatch vs matched bf16 reference (multi-tile)"

    print("KERNEL_OK")
</pallas_src>

<mosaic_0001>
module attributes {stable_mosaic.version = 11 : i64} {
  func.func @kernel(%arg0: i32, %arg1: memref<16x128xbf16, #tpu.memory_space<vmem>>, %arg2: memref<128x128xbf16, #tpu.memory_space<any>>, %arg3: memref<1x128xf32, #tpu.memory_space<vmem>>, %arg4: memref<128x128xbf16, #tpu.memory_space<any>>, %arg5: memref<1x128xf32, #tpu.memory_space<vmem>>, %arg6: memref<128x128xbf16, #tpu.memory_space<any>>, %arg7: memref<1x128xf32, #tpu.memory_space<vmem>>, %arg8: memref<16x128xbf16, #tpu.memory_space<vmem>>, %arg9: memref<128x128xbf16, #tpu.memory_space<vmem>>, %arg10: memref<128x128xbf16, #tpu.memory_space<vmem>>, %arg11: memref<128x128xbf16, #tpu.memory_space<vmem>>, %arg12: memref<3x!tpu.dma_semaphore, #tpu.memory_space<semaphore_mem>>) attributes {dimension_semantics = [#tpu.dimension_semantics<arbitrary>], iteration_bounds = array<i64: 1>, scalar_prefetch = 0 : i64, scratch_operands = 4 : i64, tpu.core_type = #tpu.core_type<tc>, window_params = [{transform_indices = @transform_0, window_bounds = array<i64: 16, 128>}, {}, {pipeline_mode = #tpu.pipeline_mode<synchronous>, transform_indices = @transform_2, window_bounds = array<i64: 1, 128>}, {}, {pipeline_mode = #tpu.pipeline_mode<synchronous>, transform_indices = @transform_4, window_bounds = array<i64: 1, 128>}, {}, {pipeline_mode = #tpu.pipeline_mode<synchronous>, transform_indices = @transform_6, window_bounds = array<i64: 1, 128>}, {transform_indices = @transform_7, window_bounds = array<i64: 16, 128>}]} {
    %c0_i32 = arith.constant 0 : i32
    %0 = arith.cmpi eq, %arg0, %c0_i32 : i32
    %1 = arith.extui %0 : i1 to i32
    %c0_i32_0 = arith.constant 0 : i32
    %2 = arith.cmpi ne, %1, %c0_i32_0 : i32
    scf.if %2 {
      %c0_i32_23 = arith.constant 0 : i32
      %33 = tpu.memref_slice %arg12[%c0_i32_23] : memref<3x!tpu.dma_semaphore, #tpu.memory_space<semaphore_mem>> -> memref<1x!tpu.dma_semaphore, #tpu.memory_space<semaphore_mem>>
      %34 = tpu.memref_squeeze %33 : memref<1x!tpu.dma_semaphore, #tpu.memory_space<semaphore_mem>> -> memref<!tpu.dma_semaphore, #tpu.memory_space<semaphore_mem>>
      tpu.enqueue_dma source(%arg2 : memref<128x128xbf16, #tpu.memory_space<any>>) target(%arg9 : memref<128x128xbf16, #tpu.memory_space<vmem>>) target_semaphore(%34 : memref<!tpu.dma_semaphore, #tpu.memory_space<semaphore_mem>>)
      %c1_i32 = arith.constant 1 : i32
      %35 = tpu.memref_slice %arg12[%c1_i32] : memref<3x!tpu.dma_semaphore, #tpu.memory_space<semaphore_mem>> -> memref<1x!tpu.dma_semaphore, #tpu.memory_space<semaphore_mem>>
      %36 = tpu.memref_squeeze %35 : memref<1x!tpu.dma_semaphore, #tpu.memory_space<semaphore_mem>> -> memref<!tpu.dma_semaphore, #tpu.memory_space<semaphore_mem>>
      tpu.enqueue_dma source(%arg4 : memref<128x128xbf16, #tpu.memory_space<any>>) target(%arg10 : memref<128x128xbf16, #tpu.memory_space<vmem>>) target_semaphore(%36 : memref<!tpu.dma_semaphore, #tpu.memory_space<semaphore_mem>>)
      %c2_i32 = arith.constant 2 : i32
      %37 = tpu.memref_slice %arg12[%c2_i32] : memref<3x!tpu.dma_semaphore, #tpu.memory_space<semaphore_mem>> -> memref<1x!tpu.dma_semaphore, #tpu.memory_space<semaphore_mem>>
      %38 = tpu.memref_squeeze %37 : memref<1x!tpu.dma_semaphore, #tpu.memory_space<semaphore_mem>> -> memref<!tpu.dma_semaphore, #tpu.memory_space<semaphore_mem>>
      tpu.enqueue_dma source(%arg6 : memref<128x128xbf16, #tpu.memory_space<any>>) target(%arg11 : memref<128x128xbf16, #tpu.memory_space<vmem>>) target_semaphore(%38 : memref<!tpu.dma_semaphore, #tpu.memory_space<semaphore_mem>>)
    } else {
    }
    %c0 = arith.constant 0 : index
    %c0_1 = arith.constant 0 : index
    %3 = vector.load %arg1[%c0, %c0_1] : memref<16x128xbf16, #tpu.memory_space<vmem>>, vector<16x128xbf16>
    %4 = arith.extui %0 : i1 to i32
    %c0_i32_2 = arith.constant 0 : i32
    %5 = arith.cmpi ne, %4, %c0_i32_2 : i32
    scf.if %5 {
      %c0_i32_23 = arith.constant 0 : i32
      %33 = tpu.memref_slice %arg12[%c0_i32_23] : memref<3x!tpu.dma_semaphore, #tpu.memory_space<semaphore_mem>> -> memref<1x!tpu.dma_semaphore, #tpu.memory_space<semaphore_mem>>
      %34 = tpu.memref_squeeze %33 : memref<1x!tpu.dma_semaphore, #tpu.memory_space<semaphore_mem>> -> memref<!tpu.dma_semaphore, #tpu.memory_space<semaphore_mem>>
      tpu.wait_dma2 semaphore(%34 : memref<!tpu.dma_semaphore, #tpu.memory_space<semaphore_mem>>) src(%arg2 : memref<128x128xbf16, #tpu.memory_space<any>>) dst(%arg9 : memref<128x128xbf16, #tpu.memory_space<vmem>>)
    } else {
    }
    %c0_3 = arith.constant 0 : index
    %c0_4 = arith.constant 0 : index
    %6 = vector.load %arg9[%c0_3, %c0_4] : memref<128x128xbf16, #tpu.memory_space<vmem>>, vector<128x128xbf16>
    %c0_5 = arith.constant 0 : index
    %c0_6 = arith.constant 0 : index
    %7 = vector.load %arg3[%c0_5, %c0_6] : memref<1x128xf32, #tpu.memory_space<vmem>>, vector<1x128xf32>
    %cst = arith.constant dense<0.000000e+00> : vector<16x128xf32>
    %8 = tpu.matmul %3, %6, %cst {dimension_numbers = #tpu.dot_dimension_numbers<[1], [0], [0], [1], [0, 0, 1, 1], [], []>} : vector<16x128xbf16>, vector<128x128xbf16>, vector<16x128xf32> -> vector<16x128xf32>
    %9 = vector.broadcast %7 : vector<1x128xf32> to vector<16x128xf32>
    %10 = arith.addf %8, %9 : vector<16x128xf32>
    %cst_7 = arith.constant 0.000000e+00 : f32
    %11 = vector.broadcast %cst_7 : f32 to vector<16x128xf32>
    %12 = arith.maximumf %10, %11 : vector<16x128xf32>
    %13 = arith.truncf %12 : vector<16x128xf32> to vector<16x128xbf16>
    %14 = arith.extui %0 : i1 to i32
    %c0_i32_8 = arith.constant 0 : i32
    %15 = arith.cmpi ne, %14, %c0_i32_8 : i32
    scf.if %15 {
      %c1_i32 = arith.constant 1 : i32
      %33 = tpu.memref_slice %arg12[%c1_i32] : memref<3x!tpu.dma_semaphore, #tpu.memory_space<semaphore_mem>> -> memref<1x!tpu.dma_semaphore, #tpu.memory_space<semaphore_mem>>
      %34 = tpu.memref_squeeze %33 : memref<1x!tpu.dma_semaphore, #tpu.memory_space<semaphore_mem>> -> memref<!tpu.dma_semaphore, #tpu.memory_space<semaphore_mem>>
      tpu.wait_dma2 semaphore(%34 : memref<!tpu.dma_semaphore, #tpu.memory_space<semaphore_mem>>) src(%arg4 : memref<128x128xbf16, #tpu.memory_space<any>>) dst(%arg10 : memref<128x128xbf16, #tpu.memory_space<vmem>>)
    } else {
    }
    %c0_9 = arith.constant 0 : index
    %c0_10 = arith.constant 0 : index
    %16 = vector.load %arg10[%c0_9, %c0_10] : memref<128x128xbf16, #tpu.memory_space<vmem>>, vector<128x128xbf16>
    %c0_11 = arith.constant 0 : index
    %c0_12 = arith.constant 0 : index
    %17 = vector.load %arg5[%c0_11, %c0_12] : memref<1x128xf32, #tpu.memory_space<vmem>>, vector<1x128xf32>
    %cst_13 = arith.constant dense<0.000000e+00> : vector<16x128xf32>
    %18 = tpu.matmul %13, %16, %cst_13 {dimension_numbers = #tpu.dot_dimension_numbers<[1], [0], [0], [1], [0, 0, 1, 1], [], []>} : vector<16x128xbf16>, vector<128x128xbf16>, vector<16x128xf32> -> vector<16x128xf32>
    %19 = vector.broadcast %17 : vector<1x128xf32> to vector<16x128xf32>
    %20 = arith.addf %18, %19 : vector<16x128xf32>
    %cst_14 = arith.constant 0.000000e+00 : f32
    %21 = vector.broadcast %cst_14 : f32 to vector<16x128xf32>
    %22 = arith.maximumf %20, %21 : vector<16x128xf32>
    %23 = arith.truncf %22 : vector<16x128xf32> to vector<16x128xbf16>
    %24 = arith.extui %0 : i1 to i32
    %c0_i32_15 = arith.constant 0 : i32
    %25 = arith.cmpi ne, %24, %c0_i32_15 : i32
    scf.if %25 {
      %c2_i32 = arith.constant 2 : i32
      %33 = tpu.memref_slice %arg12[%c2_i32] : memref<3x!tpu.dma_semaphore, #tpu.memory_space<semaphore_mem>> -> memref<1x!tpu.dma_semaphore, #tpu.memory_space<semaphore_mem>>
      %34 = tpu.memref_squeeze %33 : memref<1x!tpu.dma_semaphore, #tpu.memory_space<semaphore_mem>> -> memref<!tpu.dma_semaphore, #tpu.memory_space<semaphore_mem>>
      tpu.wait_dma2 semaphore(%34 : memref<!tpu.dma_semaphore, #tpu.memory_space<semaphore_mem>>) src(%arg6 : memref<128x128xbf16, #tpu.memory_space<any>>) dst(%arg11 : memref<128x128xbf16, #tpu.memory_space<vmem>>)
    } else {
    }
    %c0_16 = arith.constant 0 : index
    %c0_17 = arith.constant 0 : index
    %26 = vector.load %arg11[%c0_16, %c0_17] : memref<128x128xbf16, #tpu.memory_space<vmem>>, vector<128x128xbf16>
    %c0_18 = arith.constant 0 : index
    %c0_19 = arith.constant 0 : index
    %27 = vector.load %arg7[%c0_18, %c0_19] : memref<1x128xf32, #tpu.memory_space<vmem>>, vector<1x128xf32>
    %cst_20 = arith.constant dense<0.000000e+00> : vector<16x128xf32>
    %28 = tpu.matmul %23, %26, %cst_20 {dimension_numbers = #tpu.dot_dimension_numbers<[1], [0], [0], [1], [0, 0, 1, 1], [], []>} : vector<16x128xbf16>, vector<128x128xbf16>, vector<16x128xf32> -> vector<16x128xf32>
    %29 = vector.broadcast %27 : vector<1x128xf32> to vector<16x128xf32>
    %30 = arith.addf %28, %29 : vector<16x128xf32>
    %31 = arith.truncf %30 : vector<16x128xf32> to vector<16x128xbf16>
    %c0_21 = arith.constant 0 : index
    %c0_22 = arith.constant 0 : index
    %32 = vector.load %arg8[%c0_21, %c0_22] : memref<16x128xbf16, #tpu.memory_space<vmem>>, vector<16x128xbf16>
    tpu.vector_store %arg8[%c0_21, %c0_22], %31 {strides = array<i32>} : memref<16x128xbf16, #tpu.memory_space<vmem>>, vector<16x128xbf16>,
    return
  }
  func.func @transform_0(%arg0: i32) -> (i32, i32) {
    %c0_i32 = arith.constant 0 : i32
    %c0_i32_0 = arith.constant 0 : i32
    return %arg0, %c0_i32 : i32, i32
  }
  func.func @transform_2(%arg0: i32) -> (i32, i32) {
    %c0_i32 = arith.constant 0 : i32
    %c0_i32_0 = arith.constant 0 : i32
    %c0_i32_1 = arith.constant 0 : i32
    return %c0_i32, %c0_i32_0 : i32, i32
  }
  func.func @transform_4(%arg0: i32) -> (i32, i32) {
    %c0_i32 = arith.constant 0 : i32
    %c0_i32_0 = arith.constant 0 : i32
    %c0_i32_1 = arith.constant 0 : i32
    return %c0_i32, %c0_i32_0 : i32, i32
  }
  func.func @transform_6(%arg0: i32) -> (i32, i32) {
    %c0_i32 = arith.constant 0 : i32
    %c0_i32_0 = arith.constant 0 : i32
    %c0_i32_1 = arith.constant 0 : i32
    return %c0_i32, %c0_i32_0 : i32, i32
  }
  func.func @transform_7(%arg0: i32) -> (i32, i32) {
    %c0_i32 = arith.constant 0 : i32
    %c0_i32_0 = arith.constant 0 : i32
    return %arg0, %c0_i32 : i32, i32
  }
}

</mosaic_0001>

<bundles_post_ra>
// kernel: tpu_custom_call.1
= control target key start
LH: loop header
LB: loop body
LE: loop exit
PB: predicated region body
PF: predicated region fallthrough
CT: control target
= control target key end

     0   :  { %12 = vsyncpa [#allocation7], 0  ;;  %s874_s0 = inlined_call_operand.hbm [shape: bf16[16,128], index: 0, kind: input, shape index: {}]   ;;  %s875_s1 = inlined_call_operand.hbm [shape: bf16[128,128], index: 1, kind: input, shape index: {}]   ;;  %s876_s2 = inlined_call_operand.vmem [shape: f32[1,128], index: 2, kind: input, shape index: {}]   ;;  %s877_s3 = inlined_call_operand.hbm [shape: bf16[128,128], index: 3, kind: input, shape index: {}]   ;;  %s878_s4 = inlined_call_operand.vmem [shape: f32[1,128], index: 4, kind: input, shape index: {}]   ;;  %s879_s5 = inlined_call_operand.hbm [shape: bf16[128,128], index: 5, kind: input, shape index: {}]   ;;  %s880_s6 = inlined_call_operand.vmem [shape: f32[1,128], index: 6, kind: input, shape index: {}]   ;;  %s881_s7 = inlined_call_operand.hbm [shape: bf16[16,128], index: 7, kind: output, shape index: {}]  }
   0x1   :  { %13 = vsyncpa [#allocation8], 0  ;;  %s765_s24 = smov [#allocation6]  }
   0x2   :  { %s19_s25 = sshll.u32 %s765_s24, 4  ;;  %s20_s25 = int_to_ptr.vmem [resolvable:$true] %s19_s25 }
   0x3   :  { %s663_s26 = scalar_lea.vmem %s20_s25, 128  ;;  %p668_p1 = scmp.lt.s32.totalorder %s20_s25, %s20_s25 }
   0x4   :  { %p664_p0 = scmp.ne.s32.totalorder %s20_s25, %s663_s26  ;;  %p669_p2 = scmp.lt.s32.totalorder %s663_s26, %s663_s26 }
   0x6   :  { %p670_p3 = por %p669_p2, %p668_p1 }
   0x8   :  { %p671_p4 = pnand %p670_p3, %p664_p0 }
   0xa   :  { %674 = shalt.err (!%p671_p4)
}
   0xb   :  { %s766_s27 = smov 64   ;;  %s767_s28 = smov 4  }
   0xc   :  { %25 = dma.hbm_to_vmem [thread:$0]  %s874_s0, 128, %s20_s25, [#allocation7], %s766_s27, %s766_s27, %s767_s28  }
   0xd   :  { %755 = dma.done.wait [#allocation7], 128  }
   0xe   :  { %756 = vsyncadd [#allocation7], 4294967168  ;;  %s768_s8 = smov [#allocation2]   ;;  %s769_s10 = smov [#allocation3]  }
   0xf   :  { %s47_s9 = sshll.u32 %s768_s8, 4  ;;  %s59_s11 = sshll.u32 %s769_s10, 4  ;;  %s48_s9 = int_to_ptr.vmem [resolvable:$true] %s47_s9  ;;  %s60_s11 = int_to_ptr.vmem [resolvable:$true] %s59_s11 }
  0x10   :  { %s683_s12 = scalar_lea.vmem %s48_s9, 1024  ;;  %p688_p6 = scmp.lt.s32.totalorder %s48_s9, %s48_s9 }
  0x11   :  { %p684_p5 = scmp.ne.s32.totalorder %s48_s9, %s683_s12  ;;  %p689_p7 = scmp.lt.s32.totalorder %s683_s12, %s683_s12 }
  0x13   :  { %p690_p8 = por %p689_p7, %p688_p6 }
  0x15   :  { %p691_p9 = pnand %p690_p8, %p684_p5 }
  0x17   :  { %694 = shalt.err (!%p691_p9)  }
  0x18   :  { %50 = dma.hbm_to_vmem [thread:$0]  %s875_s1, 1024, %s48_s9, [#allocation5] }
  0x19   :  { %s703_s0 = scalar_lea.vmem %s60_s11, 1024  ;;  %p708_p11 = scmp.lt.s32.totalorder %s60_s11, %s60_s11 }
  0x1a   :  { %p704_p10 = scmp.ne.s32.totalorder %s60_s11, %s703_s0  ;;  %p709_p12 = scmp.lt.s32.totalorder %s703_s0, %s703_s0 }
  0x1c   :  { %p710_p13 = por %p709_p12, %p708_p11 }
  0x1e   :  { %p711_p0 = pnand %p710_p13, %p704_p10 }
  0x20   :  { %714 = shalt.err (!%p711_p0)  }
  0x21   :  { %62 = dma.hbm_to_vmem [thread:$0]  %s877_s3, 1024, %s60_s11, [#allocation5 + $0x1]  ;;  %v75_v0 = vld [vmem:[#allocation6] sm:$0xf]  ;;  %v76_v1 = vld [vmem:[#allocation6 + $0x4] sm:$0xf] }
  0x22   :  { %s770_s17 = smov [#allocation4]  }
  0x23   :  { %s71_s18 = sshll.u32 %s770_s17, 4  ;;  %s72_s18 = int_to_ptr.vmem [resolvable:$true] %s71_s18 }
  0x24   :  { %s723_s19 = scalar_lea.vmem %s72_s18, 1024  ;;  %p728_p2 = scmp.lt.s32.totalorder %s72_s18, %s72_s18 }
  0x25   :  { %p724_p1 = scmp.ne.s32.totalorder %s72_s18, %s723_s19  ;;  %p729_p3 = scmp.lt.s32.totalorder %s723_s19, %s723_s19 }
  0x27   :  { %p730_p4 = por %p729_p3, %p728_p2 }
  0x29   :  { %p731_p5 = pnand %p730_p4, %p724_p1 }
  0x2b   :  { %734 = shalt.err (!%p731_p5)  }
  0x2c   :  { %74 = dma.hbm_to_vmem [thread:$0]  %s879_s5, 1024, %s72_s18, [#allocation5 + $0x2] }
  0x2d   :  { %757 = dma.done.wait [#allocation5], 1024 }
  0x2e   :  { %758 = vsyncadd [#allocation5], 4294966272  ;;  %v771_v2 = vmov 0.0   ;;  %vm772_vm0 = vmmov 0   ;;  %v631_v3 = vld [vmem:[#allocation2 + $0x38] sm:$0xff]   ;;  %v632_v4 = vld [vmem:[#allocation2 + $0x30] sm:$0xff]   ;;  %v496_v11 = vcombine.low %v75_v0, %v76_v1 }
  0x2f   :  { %562 = vmatprep.subr.bf16.mxu0 %v771_v2  ;;  %578 = vmatprep.mubr.msk.bf16.mxu0 %vm772_vm0, %v771_v2  ;;  %v633_v5 = vld [vmem:[#allocation2 + $0x28] sm:$0xff]   ;;  %v634_v6 = vld [vmem:[#allocation2 + $0x20] sm:$0xff]   ;;  %v635_v7 = vld [vmem:[#allocation2 + $0x18] sm:$0xff]  }
  0x30   :  { %563 = vmatpush3.bf16.msra.mxu0 %v631_v3  ;;  %v636_v8 = vld [vmem:[#allocation2 + $0x10] sm:$0xff]   ;;  %v637_v9 = vld [vmem:[#allocation2 + $0x8] sm:$0xff]   ;;  %v638_v10 = vld [vmem:[#allocation2] sm:$0xff]  }
  0x31   :  { %564 = vmatprep.subr.bf16.mxu0 %v771_v2  ;;  %v495_v12 = vld [vmem:[%s876_s2] ss:$0 sm:$0xff] }
  0x34   :  { %565 = vmatpush3.bf16.msra.mxu0 %v632_v4 }
  0x35   :  { %566 = vmatprep.subr.bf16.mxu0 %v771_v2 }
  0x38   :  { %567 = vmatpush3.bf16.msra.mxu0 %v633_v5 }
  0x39   :  { %568 = vmatprep.subr.bf16.mxu0 %v771_v2 }
  0x3c   :  { %569 = vmatpush3.bf16.msra.mxu0 %v634_v6 }
  0x3d   :  { %570 = vmatprep.subr.bf16.mxu0 %v771_v2 }
  0x40   :  { %571 = vmatpush3.bf16.msra.mxu0 %v635_v7 }
  0x41   :  { %572 = vmatprep.subr.bf16.mxu0 %v771_v2 }
  0x44   :  { %573 = vmatpush3.bf16.msra.mxu0 %v636_v8 }
  0x45   :  { %574 = vmatprep.subr.bf16.mxu0 %v771_v2 }
  0x48   :  { %575 = vmatpush3.bf16.msra.mxu0 %v637_v9 }
  0x49   :  { %576 = vmatprep.subr.bf16.mxu0 %v771_v2 }
  0x4c   :  { %577 = vmatpush3.bf16.msra.mxu0 %v638_v10 }
  0x4f   :  { %579 = vmatmul.mubr.bf16.vlgmr.msra.gmra.mxu0 %v496_v11 }
 0x10f   :  { %v195_v13 = vpop.f32.mrf.mxu0 }
 0x110   :  { %v196_v15 = vadd.f32 %v495_v12, %v195_v13 }
 0x111   :  { %v580_v14 = vpop.f32.mrf.mxu0 }
 0x112   :  { %v202_v19 = vmax.f32 %v196_v15, 0.0 }
 0x113   :  { %v198_v16 = vpop.f32.mrf.mxu0 }
 0x114   :  { %v199_v17 = vadd.f32 %v495_v12, %v198_v16 }
 0x115   :  { %v581_v18 = vpop.f32.mrf.mxu0 }
 0x116   :  { %v203_v20 = vmax.f32 %v199_v17, 0.0 }
 0x118   :  { %v204_v21 = vpack.c.bf16 %v203_v20, %v202_v19 }
 0x119   :  { %759 = dma.done.wait [#allocation5 + $0x1], 1024 }
 0x11a   :  { %760 = vsyncadd [#allocation5 + $0x1], 4294966272  ;;  %582 = vmatprep.subr.bf16.mxu1 %v771_v2  ;;  %598 = vmatprep.mubr.msk.bf16.mxu1 %vm772_vm0, %v771_v2  ;;  %v639_v22 = vld [vmem:[#allocation3 + $0x38] sm:$0xff]   ;;  %v640_v23 = vld [vmem:[#allocation3 + $0x30] sm:$0xff]  }
 0x11b   :  { %583 = vmatpush3.bf16.msra.mxu1 %v639_v22  ;;  %v641_v24 = vld [vmem:[#allocation3 + $0x28] sm:$0xff]   ;;  %v642_v25 = vld [vmem:[#allocation3 + $0x20] sm:$0xff]   ;;  %v643_v26 = vld [vmem:[#allocation3 + $0x18] sm:$0xff]  }
 0x11c   :  { %584 = vmatprep.subr.bf16.mxu1 %v771_v2  ;;  %v644_v27 = vld [vmem:[#allocation3 + $0x10] sm:$0xff]   ;;  %v645_v28 = vld [vmem:[#allocation3 + $0x8] sm:$0xff]   ;;  %v646_v29 = vld [vmem:[#allocation3] sm:$0xff]  }
 0x11d   :  { %v505_v30 = vld [vmem:[%s878_s4] ss:$0 sm:$0xff] }
 0x11f   :  { %585 = vmatpush3.bf16.msra.mxu1 %v640_v23 }
 0x120   :  { %586 = vmatprep.subr.bf16.mxu1 %v771_v2 }
 0x123   :  { %587 = vmatpush3.bf16.msra.mxu1 %v641_v24 }
 0x124   :  { %588 = vmatprep.subr.bf16.mxu1 %v771_v2 }
 0x127   :  { %589 = vmatpush3.bf16.msra.mxu1 %v642_v25 }
 0x128   :  { %590 = vmatprep.subr.bf16.mxu1 %v771_v2 }
 0x12b   :  { %591 = vmatpush3.bf16.msra.mxu1 %v643_v26 }
 0x12c   :  { %592 = vmatprep.subr.bf16.mxu1 %v771_v2 }
 0x12f   :  { %593 = vmatpush3.bf16.msra.mxu1 %v644_v27 }
 0x130   :  { %594 = vmatprep.subr.bf16.mxu1 %v771_v2 }
 0x133   :  { %595 = vmatpush3.bf16.msra.mxu1 %v645_v28 }
 0x134   :  { %596 = vmatprep.subr.bf16.mxu1 %v771_v2 }
 0x137   :  { %597 = vmatpush3.bf16.msra.mxu1 %v646_v29 }
 0x13a   :  { %599 = vmatmul.mubr.bf16.vlgmr.msra.gmra.mxu1 %v204_v21 }
 0x1fa   :  { %v318_v31 = vpop.f32.mrf.mxu1 }
 0x1fb   :  { %v319_v33 = vadd.f32 %v505_v30, %v318_v31 }
 0x1fc   :  { %v600_v32 = vpop.f32.mrf.mxu1 }
 0x1fd   :  { %v325_v37 = vmax.f32 %v319_v33, 0.0 }
 0x1fe   :  { %v321_v34 = vpop.f32.mrf.mxu1 }
 0x1ff   :  { %v322_v35 = vadd.f32 %v505_v30, %v321_v34 }
 0x200   :  { %v601_v36 = vpop.f32.mrf.mxu1 }
 0x201   :  { %v326_v38 = vmax.f32 %v322_v35, 0.0 }
 0x203   :  { %v327_v39 = vpack.c.bf16 %v326_v38, %v325_v37 }
 0x204   :  { %761 = dma.done.wait [#allocation5 + $0x2], 1024 }
 0x205   :  { %762 = vsyncadd [#allocation5 + $0x2], 4294966272  ;;  %602 = vmatprep.subr.bf16.mxu0 %v771_v2  ;;  %618 = vmatprep.mubr.msk.bf16.mxu0 %vm772_vm0, %v771_v2  ;;  %v647_v40 = vld [vmem:[#allocation4 + $0x38] sm:$0xff]   ;;  %v648_v41 = vld [vmem:[#allocation4 + $0x30] sm:$0xff]   ;;  %s773_s23 = smov [#allocation9]  }
 0x206   :  { %603 = vmatpush3.bf16.msra.mxu0 %v647_v40  ;;  %v649_v42 = vld [vmem:[#allocation4 + $0x28] sm:$0xff]   ;;  %v650_v43 = vld [vmem:[#allocation4 + $0x20] sm:$0xff]   ;;  %v651_v44 = vld [vmem:[#allocation4 + $0x18] sm:$0xff]   ;;  %s463_s24 = sshll.u32 %s773_s23, 4  ;;  %s464_s24 = int_to_ptr.vmem [resolvable:$true] %s463_s24 }
 0x207   :  { %604 = vmatprep.subr.bf16.mxu0 %v771_v2  ;;  %v652_v45 = vld [vmem:[#allocation4 + $0x10] sm:$0xff]   ;;  %v653_v46 = vld [vmem:[#allocation4 + $0x8] sm:$0xff]   ;;  %v654_v47 = vld [vmem:[#allocation4] sm:$0xff]   ;;  %s735_s25 = scalar_lea.vmem %s464_s24, 128  ;;  %p740_p7 = scmp.lt.s32.totalorder %s464_s24, %s464_s24 }
 0x208   :  { %v514_v49 = vld [vmem:[%s880_s6] ss:$0 sm:$0xff]  ;;  %p736_p6 = scmp.ne.s32.totalorder %s464_s24, %s735_s25  ;;  %p741_p8 = scmp.lt.s32.totalorder %s735_s25, %s735_s25 }
 0x20a   :  { %605 = vmatpush3.bf16.msra.mxu0 %v648_v41  ;;  %p742_p9 = por %p741_p8, %p740_p7 }
 0x20b   :  { %606 = vmatprep.subr.bf16.mxu0 %v771_v2 }
 0x20c   :  { %p743_p10 = pnand %p742_p9, %p736_p6 }
 0x20e   :  { %607 = vmatpush3.bf16.msra.mxu0 %v649_v42 }
 0x20f   :  { %608 = vmatprep.subr.bf16.mxu0 %v771_v2 }
 0x212   :  { %609 = vmatpush3.bf16.msra.mxu0 %v650_v43 }
 0x213   :  { %610 = vmatprep.subr.bf16.mxu0 %v771_v2 }
 0x216   :  { %611 = vmatpush3.bf16.msra.mxu0 %v651_v44 }
 0x217   :  { %612 = vmatprep.subr.bf16.mxu0 %v771_v2 }
 0x21a   :  { %613 = vmatpush3.bf16.msra.mxu0 %v652_v45 }
 0x21b   :  { %614 = vmatprep.subr.bf16.mxu0 %v771_v2 }
 0x21e   :  { %615 = vmatpush3.bf16.msra.mxu0 %v653_v46 }
 0x21f   :  { %616 = vmatprep.subr.bf16.mxu0 %v771_v2 }
 0x222   :  { %617 = vmatpush3.bf16.msra.mxu0 %v654_v47 }
 0x225   :  { %619 = vmatmul.mubr.bf16.vlgmr.msra.gmra.mxu0 %v327_v39 }
 0x2e5   :  { %v441_v48 = vpop.f32.mrf.mxu0 }
 0x2e6   :  { %v442_v52 = vadd.f32 %v514_v49, %v441_v48 }
 0x2e7   :  { %v620_v50 = vpop.f32.mrf.mxu0 }
 0x2e9   :  { %v444_v51 = vpop.f32.mrf.mxu0 }
 0x2ea   :  { %v445_v53 = vadd.f32 %v514_v49, %v444_v51 }
 0x2eb   :  { %v621_v54 = vpop.f32.mrf.mxu0 }
 0x2ec   :  { %v533_v55 = vpack.c.bf16 %v445_v53, %v442_v52 }
 0x2ee   :  { %534 = vst [vmem:[#allocation9] sm:$0xff] %v533_v55  }
 0x2ef   :  { %746 = shalt.err (!%p743_p10)
}
 0x2f0   :  { %469 = dma.vmem_to_hbm [thread:$0]  %s464_s24, 128, %s881_s7, [#allocation8], %s766_s27, %s766_s27, %s767_s28  }
 0x2f1   :  { %763 = dma.done.wait [#allocation8], 128  }
 0x2f2   :  { %764 = vsyncadd [#allocation8], 4294967168 }
 0x2f3   :  { %473 = vsyncpa [#allocation7], 1 }
 0x2f4   :  { %474 = vsyncpa [#allocation8], 1 }
 0x2f5   :  { %475 = vsyncmov [#allocation5] }
 0x2f8   :  { %s476_s29 = vpop.sfrf %475 }
 0x2f9   :  { %p525_p11 = scmp.ne.s32.totalorder %s476_s29, 0 }
 0x2fb   :  { %480 = shalt.err (%p525_p11)  }
 0x2fc   :  { %482 = vsyncmov [#allocation5 + $0x1] }
 0x2ff   :  { %s483_s30 = vpop.sfrf %482 }
 0x300   :  { %p526_p12 = scmp.ne.s32.totalorder %s483_s30, 0 }
 0x302   :  { %487 = shalt.err (%p526_p12)  }
 0x303   :  { %489 = vsyncmov [#allocation5 + $0x2] }
 0x306   :  { %s490_s8 = vpop.sfrf %489 }
 0x307   :  { %p527_p13 = scmp.ne.s32.totalorder %s490_s8, 0 }
 0x309   :  { %494 = shalt.err (%p527_p13)  }

</bundles_post_ra>
